<compile_context>
chip_gen: v5e
topology: v5e:2x2
jax: 0.10.0
libtpu: 0.0.40
codegen_flags: <defaults>
</compile_context>

<pallas_src>
import jax
import jax.numpy as jnp
from jax import lax
from jax.experimental import pallas as pl
from jax.experimental.pallas import tpu as pltpu

_MIB = 1024 * 1024
_VMEM_CAP_BYTES = 48 * _MIB        # under v7x's 64 MiB physical VMEM
_VMEM_BUDGET_BYTES = 40 * _MIB     # tile-selection budget (leaves headroom)


def _vmem_spec():
    return pl.BlockSpec(memory_space=pltpu.MemorySpace.VMEM)


# ---------------------------------------------------------------------------
# Kernel 1: Lap_kernel_theta(x_sv, x_sv, w, I)
# ---------------------------------------------------------------------------
def _lap_kernel_body(x_sv_ref, w_ref, k_ref):
    x_sv = x_sv_ref[...]                         # (F, M) f32
    w = w_ref[...]                               # (F, 1) f32
    wx = w * x_sv                                # (F, M)  == w ⊙ x_sv columns
    # ||wx[:,k]-wx[:,j]||^2 = ||wx[:,j]||^2 + ||wx[:,k]||^2 - 2*wx[:,j]·wx[:,k]
    # Contract axis 0 of both operands directly (no .T feeding the MXU); the
    # -2 scale is folded into the (F,M) LHS so no extra (M,M) VALU pass.
    neg2_gram = lax.dot_general((-2.0) * wx, wx,
                                dimension_numbers=(((0,), (0,)), ((), ())),
                                preferred_element_type=jnp.float32)   # (M, M)
    sq = jnp.sum(wx * wx, axis=0, keepdims=True)                      # (1, M)
    d2 = jnp.maximum(sq + sq.T + neg2_gram, 0.0)                      # (M, M), clamp >= 0
    k_ref[...] = jnp.exp(-jnp.sqrt(d2))


def lap_kernel_theta(x_sv, w):
    M = x_sv.shape[1]
    # TODO(synk): tile over an (Mi, Mj) output grid (gram accumulated over an
    # "arbitrary" F axis) if M grows to ~1.5k+ on v7x / ~2.5k+ on v5e/v6e.
    return pl.pallas_call(
        _lap_kernel_body,
        out_shape=jax.ShapeDtypeStruct((M, M), jnp.float32),
        in_specs=[_vmem_spec(), _vmem_spec()],
        out_specs=_vmem_spec(),
        compiler_params=pltpu.CompilerParams(
            vmem_limit_bytes=_VMEM_CAP_BYTES),
    )(x_sv, w)


# ---------------------------------------------------------------------------
# Kernel 2: Gau_kernel_theta2(x_train, x_sv, w, I) fused with alpha @ K + beta,
# tiled over N (ragged last block, no host-side pad).
# ---------------------------------------------------------------------------
def _gau_predict_body(x_ref, neg2_wxsv_ref, w_s_ref, b_col_ref,
                      alpha_ref, beta_ref, y_ref):
    x = x_ref[...]                                   # (F, TN)  streamed tile
    # a[n] = sum_f w_s[f]*x[f,n]^2  via MXU (1,F)x(F,TN): keeps the cross-
    # sublane reduction off the VALU/XLU slots.
    a = lax.dot_general(w_s_ref[...], x * x,
                        dimension_numbers=(((0,), (0,)), ((), ())),
                        preferred_element_type=jnp.float32)           # (1, TN)
    # c[m,n] = -2 * sum_f w_s[f]*x_sv[f,m]*x[f,n]  (-2 folded into resident LHS).
    # Keep f32 operands + f32 accumulation: a + b - 2c is cancellation-prone.
    c = lax.dot_general(neg2_wxsv_ref[...], x,
                        dimension_numbers=(((0,), (0,)), ((), ())),
                        preferred_element_type=jnp.float32)           # (M, TN)
    dis = jnp.maximum(b_col_ref[...] + a + c, 0.0)                    # (M, TN)
    # kmat in [0,1] -> bf16 is safe for the final matmul (f32 accumulation);
    # do NOT compute exp in bf16 (argument precision matters).
    kmat = jnp.exp(-dis).astype(jnp.bfloat16)
    y_ref[...] = (
        jnp.dot(alpha_ref[...], kmat, preferred_element_type=jnp.float32)
        + beta_ref[...]
    )


def _tile_vmem_bytes(tn, f_dim, m, cla):
    # Double-buffered streamed x_train + double-buffered output tiles.
    stream = 2 * 4 * f_dim * tn + 2 * 4 * cla * tn
    # (M,TN) temporaries: c/dis (f32, reused) + kmat (bf16) + fusion slack.
    temps = (4 + 4 + 2) * m * tn
    # Resident inputs (default pipelining still allocates 2 buffers each).
    resident = 2 * (4 * f_dim * m + 4 * f_dim + 4 * m + 2 * cla * m + 4 * cla)
    return stream + temps + resident


def _choose_tn(tn, n, f_dim, m, cla, budget=_VMEM_BUDGET_BYTES):
    # Lane-aligned N tile (multiple of 128), no larger than the padded problem,
    # and shrunk until the per-tile VMEM footprint fits the budget.
    n_aligned = pl.cdiv(n, 128) * 128
    tn = min(int(tn), n_aligned)
    tn = max(128, (tn // 128) * 128)
    while tn > 128 and _tile_vmem_bytes(tn, f_dim, m, cla) > budget:
        tn -= 128
    return tn


def gau_predict(x_train, x_sv, w, alpha, beta, *, tn=4096):
    f_dim, n = x_train.shape
    m = x_sv.shape[1]
    cla = alpha.shape[0]

    # SV-side invariants hoisted out of the per-tile body (tiny O(F*M) work,
    # done once in plain JAX and passed as resident inputs).
    inv_sqrt_f = jnp.float32(1.0 / (float(f_dim) ** 0.5))
    w_s = (w.astype(jnp.float32) * inv_sqrt_f)                     # (F, 1)
    neg2_wxsv = (-2.0) * (w_s * x_sv)                              # (F, M)
    b_col = jnp.sum(w_s * x_sv * x_sv, axis=0).reshape(m, 1)       # (M, 1)
    alpha_bf = alpha.astype(jnp.bfloat16)                          # (cla, M)

    tn = _choose_tn(tn, n, f_dim, m, cla)
    grid = (pl.cdiv(n, tn),)   # ragged last block; no pad, no output slice

    vmem_limit = int(min(max(2 * _tile_vmem_bytes(tn, f_dim, m, cla),
                             16 * _MIB), _VMEM_CAP_BYTES))

    # TODO(synk): pipeline_mode=pl.Buffered(1) on the resident inputs would
    # free one redundant VMEM copy each; left at the default for portability.
    out = pl.pallas_call(
        _gau_predict_body,
        out_shape=jax.ShapeDtypeStruct((cla, n), jnp.float32),
        grid_spec=pltpu.PrefetchScalarGridSpec(
            num_scalar_prefetch=0,
            grid=grid,
            in_specs=[
                pl.BlockSpec((f_dim, tn), lambda i: (0, i)),   # x_train: streamed
                pl.BlockSpec((f_dim, m), lambda i: (0, 0)),    # -2*w_s*x_sv: resident
                pl.BlockSpec((f_dim, 1), lambda i: (0, 0)),    # w_s: resident
                pl.BlockSpec((m, 1), lambda i: (0, 0)),        # b column: resident
                pl.BlockSpec((cla, m), lambda i: (0, 0)),      # alpha (bf16): resident
                pl.BlockSpec((cla, 1), lambda i: (0, 0)),      # beta: resident
            ],
            out_specs=pl.BlockSpec((cla, tn), lambda i: (0, i)),
        ),
        compiler_params=pltpu.CompilerParams(
            # N tiles are independent -> shard across both TCs on v7x.
            dimension_semantics=("parallel",),
            vmem_limit_bytes=vmem_limit,
        ),
        cost_estimate=pl.CostEstimate(
            flops=int(2 * (m + 1) * f_dim * n + 2 * cla * m * n),
            transcendentals=int(m * n),
            bytes_accessed=int(4 * (f_dim * n + cla * n + f_dim * m
                                    + f_dim + m + cla * m + cla)),
        ),
    )(x_train, neg2_wxsv, w_s, b_col, alpha_bf, beta)
    return out


# ---------------------------------------------------------------------------
# LAB_unroll module (forward pass, training-mode semantics)
# ---------------------------------------------------------------------------
class LABUnroll:
    def __init__(self, x_sv, y_sv, weight_ini, cla=1, lamda=1e-4):
        self.num_sv = x_sv.shape[1]
        self.feature_dim = x_sv.shape[0]
        self.cla = cla
        self.lamda = jnp.float32(lamda)
        self.x_sv = x_sv.astype(jnp.float32)
        self.y_sv = y_sv.reshape(cla, self.num_sv).astype(jnp.float32)
        self.alpha = self.y_sv
        self.beta = jnp.mean(self.y_sv, axis=1, keepdims=True)          # (cla, 1)
        self.weight = weight_ini.astype(jnp.float32)                    # (F, 1)

    def update_alpha(self):
        k_sv = lap_kernel_theta(self.x_sv, self.weight)                 # Pallas
        ele1 = self.y_sv - self.beta                                    # (cla, M)
        ele2 = k_sv + self.lamda * jnp.eye(self.num_sv, dtype=jnp.float32)
        # K_sv + λI is SPD and symmetric -> Cholesky solve is equivalent to
        # ele1 @ inv(ele2) and better conditioned.
        # TODO(synk): the small (M,M) dense solve has no clean Pallas
        # equivalent; it stays in plain JAX glue.
        cho = jax.scipy.linalg.cho_factor(ele2)
        return jax.scipy.linalg.cho_solve(cho, ele1.T).T

    def forward(self, x_train, tn=4096):
        assert x_train.shape[0] == self.x_sv.shape[0], (
            "but found {} and {}".format(x_train.shape[0], self.x_sv.shape[0]))
        self.alpha = self.update_alpha()
        return gau_predict(x_train, self.x_sv, self.weight, self.alpha,
                           self.beta, tn=tn)


# ---------------------------------------------------------------------------
# Pure-JAX reference (mirrors the PyTorch module) for validation.
# ---------------------------------------------------------------------------
def _reference_forward(x_train, x_sv, y_sv, w, cla, lamda):
    f_dim, m = x_sv.shape
    y2 = y_sv.reshape(cla, m).astype(jnp.float32)
    beta = jnp.mean(y2, axis=1, keepdims=True)
    wv = w.reshape(-1).astype(jnp.float32)
    # Laplacian kernel on support vectors.
    diff = x_sv[:, None, :] - x_sv[:, :, None]                       # (F, j, k)
    k_sv = jnp.exp(-jnp.sqrt(jnp.sum((wv[:, None, None] * diff) ** 2, axis=0)))
    alpha = (y2 - beta) @ jnp.linalg.inv(
        k_sv + jnp.float32(lamda) * jnp.eye(m, dtype=jnp.float32))
    # Gaussian kernel train-vs-sv.
    diff2 = x_train[:, None, :] - x_sv[:, :, None]                   # (F, j, n)
    dis = jnp.sum(wv[:, None, None] * diff2 ** 2, axis=0) / jnp.sqrt(
        jnp.float32(f_dim))
    return alpha @ jnp.exp(-dis) + beta


if __name__ == "__main__":
    key = jax.random.PRNGKey(0)
    k1, k2, k3, k4 = jax.random.split(key, 4)

    F_DIM = 16   # feature_dim
    M = 8        # num_sv
    N = 200      # number of training samples (non-multiple of 128: ragged tail)
    CLA = 1

    x_sv = jax.random.normal(k1, (F_DIM, M), dtype=jnp.float32)
    y_sv = jax.random.normal(k2, (M,), dtype=jnp.float32)
    weight_ini = jax.random.uniform(k3, (F_DIM, 1), dtype=jnp.float32,
                                    minval=0.1, maxval=1.0)
    x_train = jax.random.normal(k4, (F_DIM, N), dtype=jnp.float32)

    model = LABUnroll(x_sv, y_sv, weight_ini, cla=CLA, lamda=1e-4)

    # Small tile: exercises a 2-step grid whose last block is ragged (128+72).
    y_small = jax.block_until_ready(model.forward(x_train, tn=128))
    # Default tile: single step with block (F, 256) > N=200 (masked writeback).
    y_default = jax.block_until_ready(model.forward(x_train))

    assert y_small.shape == (CLA, N)
    assert y_default.shape == (CLA, N)
    assert bool(jnp.all(jnp.isfinite(y_small)))
    assert bool(jnp.all(jnp.isfinite(y_default)))

    y_ref = _reference_forward(x_train, x_sv, y_sv, weight_ini, CLA, 1e-4)
    err_small = float(jnp.max(jnp.abs(y_small - y_ref)))
    err_default = float(jnp.max(jnp.abs(y_default - y_ref)))
    assert bool(jnp.allclose(y_small, y_ref, rtol=5e-3, atol=5e-3)), err_small
    assert bool(jnp.allclose(y_default, y_ref, rtol=5e-3, atol=5e-3)), err_default
    print("KERNEL_OK")
</pallas_src>

<mosaic_0001>
module attributes {stable_mosaic.version = 11 : i64} {
  func.func @_lap_kernel_body(%arg0: memref<16x8xf32, #tpu.memory_space<vmem>>, %arg1: memref<16x1xf32, #tpu.memory_space<vmem>>, %arg2: memref<8x8xf32, #tpu.memory_space<vmem>>) attributes {dimension_semantics = [], scalar_prefetch = 0 : i64, scratch_operands = 0 : i64, tpu.core_type = #tpu.core_type<tc>} {
    %c0 = arith.constant 0 : index
    %c0_0 = arith.constant 0 : index
    %0 = vector.load %arg0[%c0, %c0_0] : memref<16x8xf32, #tpu.memory_space<vmem>>, vector<16x8xf32>
    %c0_1 = arith.constant 0 : index
    %c0_2 = arith.constant 0 : index
    %1 = vector.load %arg1[%c0_1, %c0_2] : memref<16x1xf32, #tpu.memory_space<vmem>>, vector<16x1xf32>
    %2 = vector.broadcast %1 : vector<16x1xf32> to vector<16x8xf32>
    %3 = arith.mulf %2, %0 : vector<16x8xf32>
    %cst = arith.constant -2.000000e+00 : f32
    %4 = vector.broadcast %cst : f32 to vector<16x8xf32>
    %5 = arith.mulf %4, %3 : vector<16x8xf32>
    %cst_3 = arith.constant dense<0.000000e+00> : vector<8x8xf32>
    %6 = tpu.matmul %5, %3, %cst_3 {dimension_numbers = #tpu.dot_dimension_numbers<[0], [0], [1], [1], [0, 1, 1, 1], [], []>} : vector<16x8xf32>, vector<16x8xf32>, vector<8x8xf32> -> vector<8x8xf32>
    %7 = arith.mulf %3, %3 : vector<16x8xf32>
    %cst_4 = arith.constant dense<0.000000e+00> : vector<8xf32>
    %8 = vector.multi_reduction <add>, %7, %cst_4 [0] : vector<16x8xf32> to vector<8xf32>
    %9 = vector.shape_cast %8 : vector<8xf32> to vector<1x8xf32>
    %10 = tpu.transpose %9, [1, 0] : vector<1x8xf32> -> vector<8x1xf32>
    %11 = vector.broadcast %9 : vector<1x8xf32> to vector<8x8xf32>
    %12 = vector.broadcast %10 : vector<8x1xf32> to vector<8x8xf32>
    %13 = arith.addf %11, %12 : vector<8x8xf32>
    %14 = arith.addf %13, %6 : vector<8x8xf32>
    %cst_5 = arith.constant 0.000000e+00 : f32
    %15 = vector.broadcast %cst_5 : f32 to vector<8x8xf32>
    %16 = arith.maximumf %14, %15 : vector<8x8xf32>
    %17 = math.sqrt %16 : vector<8x8xf32>
    %cst_6 = arith.constant 0.000000e+00 : f32
    %18 = vector.broadcast %cst_6 : f32 to vector<8x8xf32>
    %19 = arith.subf %18, %17 : vector<8x8xf32>
    %20 = math.exp %19 : vector<8x8xf32>
    %c0_7 = arith.constant 0 : index
    %c0_8 = arith.constant 0 : index
    %21 = vector.load %arg2[%c0_7, %c0_8] : memref<8x8xf32, #tpu.memory_space<vmem>>, vector<8x8xf32>
    tpu.vector_store %arg2[%c0_7, %c0_8], %20 {strides = array<i32>} : memref<8x8xf32, #tpu.memory_space<vmem>>, vector<8x8xf32>,
    return
  }
}

</mosaic_0001>

<bundles_post_ra>
// kernel: tpu_custom_call.1
= control target key start
LH: loop header
LB: loop body
LE: loop exit
PB: predicated region body
PF: predicated region fallthrough
CT: control target
= control target key end

     0   :  { %v206_v1 = vmov 0   ;;  %s241_s0 = inlined_call_operand.vmem [shape: f32[16,8], index: 0, kind: input, shape index: {}]   ;;  %s242_s1 = inlined_call_operand.vmem [shape: f32[16,1], index: 1, kind: input, shape index: {}]   ;;  %s243_s2 = inlined_call_operand.hbm [shape: f32[8,8], index: 2, kind: output, shape index: {}]  }
   0x1   :  { %v14_v0 = vld [vmem:[%s242_s1] sm:$0xff]  ;;  %174 = vset.pattern.permute.xlu0 %v206_v1 }
   0x2   :  { %7 = vsyncpa [#allocation3], 0  ;;  %18 = vperm.xlu0 %174, %v14_v0   ;;  %v15_v2 = vld [vmem:[%s242_s1 + $0x8] sm:$0xff]  ;;  %v12_v3 = vld [vmem:[%s241_s0] sm:$0xff]  ;;  %vm88_vm0 = vcmask 64512   ;;  %vm62_vm1 = vcmask 130048  }
   0x3   :  { %v13_v7 = vld [vmem:[%s241_s0 + $0x8] sm:$0xff]  ;;  %s207_s0 = smov [#allocation2]   ;;  %s161_s19 = sshll.u32 %s243_s2, 4  ;;  %s162_s19 = int_to_ptr.hbm [resolvable:$true] %s161_s19 }
   0x4   :  { %s159_s1 = sshll.u32 %s207_s0, 4  ;;  %s160_s1 = int_to_ptr.vmem [resolvable:$true] %s159_s1 }
   0xa   :  { %23 = vperm.xlu0 %174, %v15_v2  }
  0x74   :  { %v19_v4 = vpop.permute.xlu0 %18 }
  0x75   :  { %v26_v5 = vmul.f32 %v19_v4, %v12_v3 }
  0x77   :  { %v28_v6 = vmul.f32 -2.0, %v26_v5  ;;  %v86_v9 = vmul.f32 %v26_v5, %v26_v5 }
  0x79   :  { %30 = vxpose.xlu1.b32.start [1/2] (short) (narrow) %v28_v6, 8  ;;  %v89_v13 = vsel %vm88_vm0, %v86_v9, 0.0 }
  0x7c   :  { %v24_v8 = vpop.permute.xlu0 %23 }
  0x7d   :  { %v27_v10 = vmul.f32 %v24_v8, %v13_v7 }
  0x7f   :  { %v87_v11 = vmul.f32 %v27_v10, %v27_v10  ;;  %80 = vmatpush.msra.mxu0 %v27_v10  ;;  %v29_v12 = vmul.f32 -2.0, %v27_v10 }
  0x81   :  { %v90_v14 = vsel %vm88_vm0, %v87_v11, 0.0  ;;  %81 = vmatpush.msra.mxu0 %v26_v5  ;;  %31 = vxpose.xlu1.b32.end [2/2] (short) (narrow) %v29_v12, 8 }
  0x82   :  { %v91_v15 = vadd.f32 %v90_v14, %v89_v13 }
  0x84   :  { %v92_v16 = vrot.slane %v91_v15, 4 }
  0x86   :  { %v93_v17 = vadd.f32 %v92_v16, %v91_v15 }
  0x88   :  { %v94_v18 = vrot.slane %v93_v17, 2 }
  0x8a   :  { %v95_v19 = vadd.f32 %v94_v18, %v93_v17 }
  0x8c   :  { %v96_v20 = vrot.slane %v95_v19, 1 }
  0x8e   :  { %v97_v21 = vadd.f32 %v96_v20, %v95_v19 }
  0x90   :  { %98 = vxpose.xlu2.b32.start.end [1/1] (short) (narrow) %v97_v21, 8 }
  0xf2   :  { %175 = vset.pattern.permute.xlu2 %v206_v1 }
 0x11d   :  { %v46_v22 = vpop.trf.xlu1 }
 0x11e   :  { %170 = vmatmul.msk.f32.vlgmr.msra.gmra.mxu0 %vm62_vm1, %v46_v22 }
 0x129   :  { %v114_v23 = vpop.trf.xlu2 }
 0x12a   :  { %132 = vperm.xlu2 %175, %v114_v23  }
 0x184   :  { %v133_v24 = vpop.permute.xlu2 %132 }
 0x185   :  { %v135_v25 = vadd.f32 %v133_v24, %v97_v21 }
 0x19b   :  { %v83_v26 = vpop.f32.mrf.mxu0 }
 0x19c   :  { %v136_v27 = vadd.f32 %v135_v25, %v83_v26 }
 0x19e   :  { %v137_v28 = vmax.f32 %v136_v27, 0.0 }
 0x1a0   :  { %176 = vrsqrt.f32 %v137_v28  ;;  %vm145_vm2 = vcmp.eq.f32.partialorder %v137_v28, inf  ;;  %v148_v36 = vand.u32 2147483648, %v137_v28  ;;  %vm147_vm3 = vcmp.eq.f32.partialorder %v137_v28, 0.0 }
 0x1a6   :  { %v177_v29 = vpop.eup %176 }
 0x1a7   :  { %v139_v30 = vmul.f32 %v177_v29, %v137_v28 }
 0x1a9   :  { %v140_v31 = vmul.f32 %v177_v29, %v139_v30 }
 0x1ab   :  { %v141_v32 = vmul.f32 0.5, %v140_v31 }
 0x1ad   :  { %v142_v33 = vsub.f32 1.5, %v141_v32 }
 0x1af   :  { %v143_v34 = vmul.f32 %v177_v29, %v142_v33 }
 0x1b1   :  { %v144_v35 = vmul.f32 %v143_v34, %v137_v28 }
 0x1b3   :  { %v146_v37 = vsel %vm145_vm2, %v137_v28, %v144_v35 }
 0x1b4   :  { %v149_v38 = vsel %vm147_vm3, %v148_v36, %v146_v37 }
 0x1b5   :  { %v150_v39 = vsub.f32 0.0, %v149_v38 }
 0x1b7   :  { %v151_v40 = vmul.f32 1.442695, %v150_v39 }
 0x1b9   :  { %178 = vpow2.f32 %v151_v40 }
 0x1bf   :  { %v179_v41 = vpop.eup %178 }
 0x1c0   :  { %153 = vst.msk [vmem:[#allocation2] sm:$0xff] %vm88_vm0, %v179_v41 }
 0x1c1   :  { %164 = dma.vmem_to_hbm [thread:$0]  %s160_s1, 128, %s162_s19, [#allocation3]  }
 0x1c2   :  { %204 = dma.done.wait [#allocation3], 128  }
 0x1c3   :  { %205 = vsyncadd [#allocation3], 4294967168 }
 0x1c4   :  { %169 = vsyncpa [#allocation3], 1 }

</bundles_post_ra>
